<compile_context>
chip_gen: v7x
topology: tpu7x:2x2x1
jax: 0.10.0
libtpu: 0.0.40
codegen_flags: <defaults>
</compile_context>

<pallas_src>
import functools

import jax
import jax.numpy as jnp
from jax.experimental import pallas as pl
from jax.experimental.pallas import tpu as pltpu

NEG_SLOPE = 0.01   # nn.LeakyReLU() default negative_slope
TB_MAX = 4096      # batch-tile ceiling (review: 4096-8192; 4096 keeps VMEM comfortably in budget)


def _round_up(n, m):
    return ((n + m - 1) // m) * m


def _leaky_relu_f32(x):
    return jnp.where(x > 0, x, NEG_SLOPE * x)


def mlp_kernel(x_ref, w1_ref, b1_ref, w2_ref, b2_ref, w3_ref, b3_ref, o_ref):
    # x tile: (tb, input_size) f32 streamed straight from HBM; cast to bf16 in-kernel (VPU slack)
    # right before the first MXU dot.  Weights/biases are VMEM-resident (constant index_maps).
    x = x_ref[...].astype(jnp.bfloat16)

    h1 = jnp.dot(x, w1_ref[...], preferred_element_type=jnp.float32) + b1_ref[...]
    h1 = _leaky_relu_f32(h1).astype(jnp.bfloat16)   # select in f32, downcast only for the next dot

    h2 = jnp.dot(h1, w2_ref[...], preferred_element_type=jnp.float32) + b2_ref[...]
    h2 = _leaky_relu_f32(h2).astype(jnp.bfloat16)

    out = jnp.dot(h2, w3_ref[...], preferred_element_type=jnp.float32) + b3_ref[...]
    o_ref[...] = out.astype(o_ref.dtype)            # (tb, num_classes) — minimal writeback bytes


def _pick_tile(batch, tb):
    if tb is not None:
        return tb
    if batch <= TB_MAX:
        return batch                      # single step; block == full array (always legal)
    n_steps = pl.cdiv(batch, TB_MAX)
    if n_steps > 1 and n_steps % 2 == 1:  # v7x: even step count -> clean split across the 2 TCs
        n_steps += 1
    return _round_up(pl.cdiv(batch, n_steps), 8)


@functools.partial(jax.jit, static_argnames=("tb",))
def mlp_forward(x, params, *, tb=None):
    """x: (B, input_size) f32.  params: prepared params (weights (in,out) bf16, biases (1,out) f32)."""
    B, input_size = x.shape
    num_classes = params["w3"].shape[1]

    tb = _pick_tile(B, tb)
    grid = (pl.cdiv(B, tb),)   # ragged last block handled by Pallas (no host-side padding/slicing)

    def const_spec(shape):
        return pl.BlockSpec(shape, lambda i: (0, 0))

    return pl.pallas_call(
        mlp_kernel,
        out_shape=jax.ShapeDtypeStruct((B, num_classes), jnp.float32),
        grid=grid,
        in_specs=[
            pl.BlockSpec((tb, input_size), lambda i: (i, 0)),   # streamed f32 x tiles
            const_spec(params["w1"].shape),
            const_spec(params["b1"].shape),
            const_spec(params["w2"].shape),
            const_spec(params["b2"].shape),
            const_spec(params["w3"].shape),
            const_spec(params["b3"].shape),
        ],
        out_specs=pl.BlockSpec((tb, num_classes), lambda i: (i, 0)),
        compiler_params=pltpu.CompilerParams(dimension_semantics=("parallel",)),
    )(x, params["w1"], params["b1"], params["w2"], params["b2"], params["w3"], params["b3"])


def prepare_params(raw):
    """One-time prep hoisted out of the forward (per review): bf16 weights (in,out), f32 biases."""
    return {
        "w1": raw["w1"].astype(jnp.bfloat16), "b1": raw["b1"].astype(jnp.float32),
        "w2": raw["w2"].astype(jnp.bfloat16), "b2": raw["b2"].astype(jnp.float32),
        "w3": raw["w3"].astype(jnp.bfloat16), "b3": raw["b3"].astype(jnp.float32),
    }


def init_params(key, input_size, num_classes):
    """Deterministic init mimicking nn.Linear (weights stored transposed (in,out), f32 master copy)."""
    ks = jax.random.split(key, 6)

    def linear_init(kw, kb, fan_in, fan_out):
        bound = 1.0 / jnp.sqrt(fan_in)
        w = jax.random.uniform(kw, (fan_in, fan_out), jnp.float32, -bound, bound)
        b = jax.random.uniform(kb, (1, fan_out), jnp.float32, -bound, bound)
        return w, b

    w1, b1 = linear_init(ks[0], ks[1], input_size, 16)
    w2, b2 = linear_init(ks[2], ks[3], 16, 8)
    w3, b3 = linear_init(ks[4], ks[5], 8, num_classes)
    return {"w1": w1, "b1": b1, "w2": w2, "b2": b2, "w3": w3, "b3": b3}


def reference_forward(x, p):
    # f32 reference of the original module's forward.
    h1 = _leaky_relu_f32(x @ p["w1"] + p["b1"])
    h2 = _leaky_relu_f32(h1 @ p["w2"] + p["b2"])
    return h2 @ p["w3"] + p["b3"]


if __name__ == "__main__":
    input_size = 32
    num_classes = 4

    key = jax.random.PRNGKey(0)
    kx1, kx2, kx3, kp = jax.random.split(key, 4)

    raw = init_params(kp, input_size, num_classes)
    params = prepare_params(raw)

    # Single-tile case (whole batch in one block).
    x1 = jax.random.normal(kx1, (8, input_size), jnp.float32)
    out1 = jax.block_until_ready(mlp_forward(x1, params))
    ref1 = reference_forward(x1, raw)
    assert out1.shape == (8, num_classes)
    assert jnp.allclose(out1, ref1, atol=3e-2, rtol=3e-2), "single-tile mismatch"

    # Multi-tile grid, evenly divided (3 steps of 8 rows).
    x2 = jax.random.normal(kx2, (24, input_size), jnp.float32)
    out2 = jax.block_until_ready(mlp_forward(x2, params, tb=8))
    ref2 = reference_forward(x2, raw)
    assert out2.shape == (24, num_classes)
    assert jnp.allclose(out2, ref2, atol=3e-2, rtol=3e-2), "multi-tile mismatch"

    # Ragged batch: cdiv grid with a partial last block (no host-side padding or output slicing).
    x3 = jax.random.normal(kx3, (20, input_size), jnp.float32)
    out3 = jax.block_until_ready(mlp_forward(x3, params, tb=8))
    ref3 = reference_forward(x3, raw)
    assert out3.shape == (20, num_classes)
    assert jnp.allclose(out3, ref3, atol=3e-2, rtol=3e-2), "ragged-tile mismatch"

    print("KERNEL_OK")
</pallas_src>

<mosaic_0001>
module attributes {stable_mosaic.version = 11 : i64} {
  func.func @mlp_kernel(%arg0: i32, %arg1: memref<8x32xf32, #tpu.memory_space<vmem>>, %arg2: memref<32x16xbf16, #tpu.memory_space<vmem>>, %arg3: memref<1x16xf32, #tpu.memory_space<vmem>>, %arg4: memref<16x8xbf16, #tpu.memory_space<vmem>>, %arg5: memref<1x8xf32, #tpu.memory_space<vmem>>, %arg6: memref<8x4xbf16, #tpu.memory_space<vmem>>, %arg7: memref<1x4xf32, #tpu.memory_space<vmem>>, %arg8: memref<8x4xf32, #tpu.memory_space<vmem>>) attributes {dimension_semantics = [#tpu.dimension_semantics<parallel>], iteration_bounds = array<i64: 1>, scalar_prefetch = 0 : i64, scratch_operands = 0 : i64, tpu.core_type = #tpu.core_type<tc>, window_params = [{transform_indices = @transform_0, window_bounds = array<i64: 8, 32>}, {pipeline_mode = #tpu.pipeline_mode<synchronous>, transform_indices = @transform_1, window_bounds = array<i64: 32, 16>}, {pipeline_mode = #tpu.pipeline_mode<synchronous>, transform_indices = @transform_2, window_bounds = array<i64: 1, 16>}, {pipeline_mode = #tpu.pipeline_mode<synchronous>, transform_indices = @transform_3, window_bounds = array<i64: 16, 8>}, {pipeline_mode = #tpu.pipeline_mode<synchronous>, transform_indices = @transform_4, window_bounds = array<i64: 1, 8>}, {pipeline_mode = #tpu.pipeline_mode<synchronous>, transform_indices = @transform_5, window_bounds = array<i64: 8, 4>}, {pipeline_mode = #tpu.pipeline_mode<synchronous>, transform_indices = @transform_6, window_bounds = array<i64: 1, 4>}, {transform_indices = @transform_7, window_bounds = array<i64: 8, 4>}]} {
    %c0 = arith.constant 0 : index
    %c0_0 = arith.constant 0 : index
    %0 = vector.load %arg1[%c0, %c0_0] : memref<8x32xf32, #tpu.memory_space<vmem>>, vector<8x32xf32>
    %1 = arith.truncf %0 : vector<8x32xf32> to vector<8x32xbf16>
    %c0_1 = arith.constant 0 : index
    %c0_2 = arith.constant 0 : index
    %2 = vector.load %arg2[%c0_1, %c0_2] : memref<32x16xbf16, #tpu.memory_space<vmem>>, vector<32x16xbf16>
    %cst = arith.constant dense<0.000000e+00> : vector<8x16xf32>
    %3 = tpu.matmul %1, %2, %cst {dimension_numbers = #tpu.dot_dimension_numbers<[1], [0], [0], [1], [0, 0, 1, 1], [], []>} : vector<8x32xbf16>, vector<32x16xbf16>, vector<8x16xf32> -> vector<8x16xf32>
    %c0_3 = arith.constant 0 : index
    %c0_4 = arith.constant 0 : index
    %4 = vector.load %arg3[%c0_3, %c0_4] : memref<1x16xf32, #tpu.memory_space<vmem>>, vector<1x16xf32>
    %5 = vector.broadcast %4 : vector<1x16xf32> to vector<8x16xf32>
    %6 = arith.addf %3, %5 : vector<8x16xf32>
    %cst_5 = arith.constant 0.000000e+00 : f32
    %7 = vector.broadcast %cst_5 : f32 to vector<8x16xf32>
    %8 = arith.cmpf ogt, %6, %7 : vector<8x16xf32>
    %cst_6 = arith.constant 0.00999999977 : f32
    %9 = vector.broadcast %cst_6 : f32 to vector<8x16xf32>
    %10 = arith.mulf %9, %6 : vector<8x16xf32>
    %11 = arith.select %8, %6, %10 : vector<8x16xi1>, vector<8x16xf32>
    %12 = arith.truncf %11 : vector<8x16xf32> to vector<8x16xbf16>
    %c0_7 = arith.constant 0 : index
    %c0_8 = arith.constant 0 : index
    %13 = vector.load %arg4[%c0_7, %c0_8] : memref<16x8xbf16, #tpu.memory_space<vmem>>, vector<16x8xbf16>
    %cst_9 = arith.constant dense<0.000000e+00> : vector<8x8xf32>
    %14 = tpu.matmul %12, %13, %cst_9 {dimension_numbers = #tpu.dot_dimension_numbers<[1], [0], [0], [1], [0, 0, 1, 1], [], []>} : vector<8x16xbf16>, vector<16x8xbf16>, vector<8x8xf32> -> vector<8x8xf32>
    %c0_10 = arith.constant 0 : index
    %c0_11 = arith.constant 0 : index
    %15 = vector.load %arg5[%c0_10, %c0_11] : memref<1x8xf32, #tpu.memory_space<vmem>>, vector<1x8xf32>
    %16 = vector.broadcast %15 : vector<1x8xf32> to vector<8x8xf32>
    %17 = arith.addf %14, %16 : vector<8x8xf32>
    %cst_12 = arith.constant 0.000000e+00 : f32
    %18 = vector.broadcast %cst_12 : f32 to vector<8x8xf32>
    %19 = arith.cmpf ogt, %17, %18 : vector<8x8xf32>
    %cst_13 = arith.constant 0.00999999977 : f32
    %20 = vector.broadcast %cst_13 : f32 to vector<8x8xf32>
    %21 = arith.mulf %20, %17 : vector<8x8xf32>
    %22 = arith.select %19, %17, %21 : vector<8x8xi1>, vector<8x8xf32>
    %23 = arith.truncf %22 : vector<8x8xf32> to vector<8x8xbf16>
    %c0_14 = arith.constant 0 : index
    %c0_15 = arith.constant 0 : index
    %24 = vector.load %arg6[%c0_14, %c0_15] : memref<8x4xbf16, #tpu.memory_space<vmem>>, vector<8x4xbf16>
    %cst_16 = arith.constant dense<0.000000e+00> : vector<8x4xf32>
    %25 = tpu.matmul %23, %24, %cst_16 {dimension_numbers = #tpu.dot_dimension_numbers<[1], [0], [0], [1], [0, 0, 1, 1], [], []>} : vector<8x8xbf16>, vector<8x4xbf16>, vector<8x4xf32> -> vector<8x4xf32>
    %c0_17 = arith.constant 0 : index
    %c0_18 = arith.constant 0 : index
    %26 = vector.load %arg7[%c0_17, %c0_18] : memref<1x4xf32, #tpu.memory_space<vmem>>, vector<1x4xf32>
    %27 = vector.broadcast %26 : vector<1x4xf32> to vector<8x4xf32>
    %28 = arith.addf %25, %27 : vector<8x4xf32>
    %c0_19 = arith.constant 0 : index
    %c0_20 = arith.constant 0 : index
    %29 = vector.load %arg8[%c0_19, %c0_20] : memref<8x4xf32, #tpu.memory_space<vmem>>, vector<8x4xf32>
    tpu.vector_store %arg8[%c0_19, %c0_20], %28 {strides = array<i32>} : memref<8x4xf32, #tpu.memory_space<vmem>>, vector<8x4xf32>,
    return
  }
  func.func @transform_0(%arg0: i32) -> (i32, i32) {
    %c0_i32 = arith.constant 0 : i32
    %c0_i32_0 = arith.constant 0 : i32
    return %arg0, %c0_i32 : i32, i32
  }
  func.func @transform_1(%arg0: i32) -> (i32, i32) {
    %c0_i32 = arith.constant 0 : i32
    %c0_i32_0 = arith.constant 0 : i32
    %c0_i32_1 = arith.constant 0 : i32
    return %c0_i32, %c0_i32_0 : i32, i32
  }
  func.func @transform_2(%arg0: i32) -> (i32, i32) {
    %c0_i32 = arith.constant 0 : i32
    %c0_i32_0 = arith.constant 0 : i32
    %c0_i32_1 = arith.constant 0 : i32
    return %c0_i32, %c0_i32_0 : i32, i32
  }
  func.func @transform_3(%arg0: i32) -> (i32, i32) {
    %c0_i32 = arith.constant 0 : i32
    %c0_i32_0 = arith.constant 0 : i32
    %c0_i32_1 = arith.constant 0 : i32
    return %c0_i32, %c0_i32_0 : i32, i32
  }
  func.func @transform_4(%arg0: i32) -> (i32, i32) {
    %c0_i32 = arith.constant 0 : i32
    %c0_i32_0 = arith.constant 0 : i32
    %c0_i32_1 = arith.constant 0 : i32
    return %c0_i32, %c0_i32_0 : i32, i32
  }
  func.func @transform_5(%arg0: i32) -> (i32, i32) {
    %c0_i32 = arith.constant 0 : i32
    %c0_i32_0 = arith.constant 0 : i32
    %c0_i32_1 = arith.constant 0 : i32
    return %c0_i32, %c0_i32_0 : i32, i32
  }
  func.func @transform_6(%arg0: i32) -> (i32, i32) {
    %c0_i32 = arith.constant 0 : i32
    %c0_i32_0 = arith.constant 0 : i32
    %c0_i32_1 = arith.constant 0 : i32
    return %c0_i32, %c0_i32_0 : i32, i32
  }
  func.func @transform_7(%arg0: i32) -> (i32, i32) {
    %c0_i32 = arith.constant 0 : i32
    %c0_i32_0 = arith.constant 0 : i32
    return %arg0, %c0_i32 : i32, i32
  }
}

</mosaic_0001>

<bundles_post_ra>
// kernel: mlp_forward.1
= control target key start
LH: loop header
LB: loop body
LE: loop exit
PB: predicated region body
PF: predicated region fallthrough
CT: control target
= control target key end

     0   :  { %v266_v0 = vmov 0.0   ;;  %vm267_vm0 = vmmov 0   ;;  %vm52_vm1 = vcmask 261120   ;;  %vm115_vm3 = vcmask 130048   ;;  %s338_s1 = inlined_call_operand.vmem [shape: bf16[32,16], index: 1, kind: input, shape index: {}]   ;;  %s339_s0 = inlined_call_operand.vmem [shape: f32[8,32], index: 0, kind: input, shape index: {}]   ;;  %s340_s3 = inlined_call_operand.vmem [shape: bf16[16,8], index: 3, kind: input, shape index: {}]   ;;  %s341_s2 = inlined_call_operand.vmem [shape: f32[1,16], index: 2, kind: input, shape index: {}]   ;;  %s342_s5 = inlined_call_operand.vmem [shape: bf16[8,4], index: 5, kind: input, shape index: {}]   ;;  %s343_s4 = inlined_call_operand.vmem [shape: f32[1,8], index: 4, kind: input, shape index: {}]   ;;  %s344_s6 = inlined_call_operand.vmem [shape: f32[1,4], index: 6, kind: input, shape index: {}]   ;;  %s345_s7 = inlined_call_operand.vmem [shape: f32[8,4], index: 7, kind: output, shape index: {}]  }
   0x1   :  { %241 = vmatprep.subr.bf16.mxu0 %v266_v0  ;;  %v263_v1 = vld [vmem:[%s338_s1] sm:$0xff]   ;;  %245 = vmatprep.mubr.msk.bf16.mxu0 %vm267_vm0, %v266_v0  ;;  %v264_v2 = vld [vmem:[%s338_s1 + $0x8] sm:$0xff]   ;;  %vm175_vm4 = vcmask 1043456   ;;  %vm171_vm6 = vcmask 64512   ;;  %vm219_vm7 = vcmask 31744  }
   0x2   :  { %249 = vmatprep.subr.bf16.mxu1 %v266_v0  ;;  %251 = vmatprep.mubr.msk.bf16.mxu1 %vm267_vm0, %v266_v0  ;;  %v27_v3 = vld [vmem:[%s339_s0] sm:$0xff] }
   0x3   :  { %242 = vmatpush3.bf16.msra.mxu0 %v263_v1  ;;  %v28_v4 = vpack.c.bf16 %v27_v3, %v27_v3  ;;  %v265_v5 = vld [vmem:[%s340_s3] sm:$0xff]  }
   0x4   :  { %243 = vmatprep.subr.bf16.mxu0 %v266_v0  ;;  %250 = vmatpush3.bf16.msra.mxu1 %v265_v5  ;;  %v225_v6 = vld [vmem:[%s341_s2] ss:$0 sm:$0xff] }
   0x5   :  { %255 = vmatprep.subr.bf16.mxu1 %v266_v0  ;;  %v163_v15 = vld [vmem:[%s342_s5] sm:$0xf] }
   0x6   :  { %v177_v16 = vsel %vm175_vm4, %v163_v15, 0  ;;  %v229_v17 = vld [vmem:[%s343_s4] ss:$0 sm:$0xff] }
   0x7   :  { %244 = vmatpush3.bf16.msra.mxu0 %v264_v2  ;;  %v232_v26 = vld [vmem:[%s344_s6] ss:$0 sm:$0xff] }
   0xa   :  { %246 = vmatmul.mubr.msk.bf16.vlgmr.msra.gmra.mrb[0].mxu0 %vm52_vm1, %v28_v4 }
  0xdd   :  { %v90_v7 = vpop.f32.mrb[0].mxu0 }
  0xde   :  { %v91_v8 = vadd.f32 %v225_v6, %v90_v7  ;;  %v247_v9 = vpop.f32.mrb[1].mxu0 }
  0xdf   :  { %v93_v10 = vpop.f32.mrb[2].mxu0 }
  0xe0   :  { %vm96_vm2 = vcmp.gt.f32.partialorder %v91_v8, 0.0  ;;  %v97_v11 = vmul.f32 0.01, %v91_v8  ;;  %v248_v12 = vpop.f32.mrb[3].mxu0 }
  0xe2   :  { %v98_v13 = vsel %vm96_vm2, %v91_v8, %v97_v11 }
  0xe3   :  { %v99_v14 = vpack.c.bf16 %v98_v13, %v98_v13 }
  0xe5   :  { %252 = vmatmul.mubr.msk.bf16.vlgmr.msra.gmra.mrb[0].mxu1 %vm115_vm3, %v99_v14 }
  0xe6   :  { %257 = vmatprep.mubr.msk.bf16.mxu1 %vm267_vm0, %v266_v0  ;;  %256 = vmatpush3.bf16.msra.mxu1 %v177_v16 }
 0x1b8   :  { %v153_v18 = vpop.f32.mrb[0].mxu1 }
 0x1b9   :  { %v154_v19 = vadd.f32 %v229_v17, %v153_v18  ;;  %v253_v20 = vpop.f32.mrb[1].mxu1 }
 0x1ba   :  { %v156_v21 = vpop.f32.mrb[2].mxu1 }
 0x1bb   :  { %vm159_vm5 = vcmp.gt.f32.partialorder %v154_v19, 0.0  ;;  %v160_v22 = vmul.f32 0.01, %v154_v19  ;;  %v254_v23 = vpop.f32.mrb[3].mxu1 }
 0x1bd   :  { %v161_v24 = vsel %vm159_vm5, %v154_v19, %v160_v22 }
 0x1be   :  { %v162_v25 = vpack.c.bf16 %v161_v24, %v161_v24 }
 0x1c0   :  { %258 = vmatmul.mubr.msk.bf16.vlgmr.msra.gmra.mrb[4].mxu1 %vm171_vm6, %v162_v25 }
 0x293   :  { %v213_v27 = vpop.f32.mrb[4].mxu1 }
 0x294   :  { %v214_v28 = vadd.f32 %v232_v26, %v213_v27  ;;  %v259_v29 = vpop.f32.mrb[5].mxu1 }
 0x295   :  { %v216_v30 = vpop.f32.mrb[6].mxu1 }
 0x296   :  { %220 = vst.msk [vmem:[%s345_s7] sm:$0xff] %vm219_vm7, %v214_v28  ;;  %v260_v31 = vpop.f32.mrb[7].mxu1 }

</bundles_post_ra>
